<compile_context>
chip_gen: v7x
topology: tpu7x:2x2x1
jax: 0.10.0
libtpu: 0.0.40
codegen_flags: <defaults>
</compile_context>

<pallas_src>
import jax
import jax.numpy as jnp
from jax.experimental import pallas as pl
from jax.experimental.pallas import tpu as pltpu


def _linear_kernel(x_ref, w_ref, b_ref, o_ref):
    # x_ref: (tm, tk), w_ref: (tk, tn) [already (K, N) layout -> no in-kernel
    # transpose], b_ref: (1, tn) f32, o_ref: (tm, tn) f32 output block.
    # Output block index is constant over k -> VMEM-resident accumulator.
    @pl.when(pl.program_id(2) == 0)
    def _():
        o_ref[...] = jnp.broadcast_to(b_ref[...], o_ref.shape).astype(o_ref.dtype)

    o_ref[...] += jnp.dot(
        x_ref[...], w_ref[...], preferred_element_type=jnp.float32
    )


def _round_up(x, m):
    return (x + m - 1) // m * m


def _pick_tile(extent, target, granule):
    """Largest multiple of `granule` that divides `extent` and is <= target."""
    t = max(granule, min(target, extent))
    t = (t // granule) * granule
    for cand in range(t, granule - 1, -granule):
        if extent % cand == 0:
            return cand
    return granule


def prepare_linear_params(weight, bias, compute_dtype=jnp.float32):
    """One-time weight/bias prep (transpose + lane-dense pad).

    weight: (N, K) torch convention -> returns (K_pad, N_pad) in compute_dtype
    plus (1, N_pad) f32 bias. Call once per weight (off the per-call hot path).
    """
    N, K = weight.shape
    K_pad = _round_up(K, 128)
    N_pad = _round_up(N, 128)
    w_p = jnp.pad(weight.astype(compute_dtype).T, ((0, K_pad - K), (0, N_pad - N)))
    b = jnp.zeros((N,), jnp.float32) if bias is None else bias.astype(jnp.float32)
    b_p = jnp.pad(b, (0, N_pad - N)).reshape(1, N_pad)
    return w_p, b_p


def linear_forward_prepared(x, w_p, b_p, n_out, *, tm=512, tn=512, tk=1024,
                            compute_dtype=jnp.float32):
    M, K = x.shape
    K_pad, N_pad = w_p.shape
    assert K <= K_pad

    # Pad only to hardware granularity (8 sublanes / 128 lanes); then pick tile
    # sizes that divide the padded extents -> no tile-sized zero-padding waste.
    M_pad = _round_up(M, 8)
    tm = _pick_tile(M_pad, tm, 8)
    tn = _pick_tile(N_pad, tn, 128)
    tk = _pick_tile(K_pad, tk, 128)

    # Ensure >= 2 blocks along a parallel axis so both TensorCores on
    # megacore / v7x chips get work even for small problems.
    if (M_pad // tm) * (N_pad // tn) < 2:
        if N_pad // 128 >= 2:
            tn = _pick_tile(N_pad, N_pad // 2, 128)
        elif M_pad // 8 >= 2:
            tm = _pick_tile(M_pad, M_pad // 2, 8)

    grid = (M_pad // tm, N_pad // tn, K_pad // tk)

    # x padding is per-call (x changes per call) but only to 8/128 granularity.
    x_p = jnp.pad(x.astype(compute_dtype), ((0, M_pad - M), (0, K_pad - K)))

    in_itemsize = jnp.dtype(compute_dtype).itemsize
    # Truthful HBM traffic: x is re-read once per N block, W once per M block.
    bytes_accessed = (
        M_pad * K_pad * in_itemsize * grid[1]
        + K_pad * N_pad * in_itemsize * grid[0]
        + M_pad * N_pad * 4
        + N_pad * 4
    )

    # Double-buffered input tiles + output block; only raise the scoped-VMEM
    # limit when the tiling actually needs it (v7x has 64 MiB physical VMEM).
    vmem_need = 2 * (tm * tk + tk * tn) * in_itemsize + 2 * tm * tn * 4 + 2 * tn * 4
    cp_kwargs = dict(dimension_semantics=("parallel", "parallel", "arbitrary"))
    if vmem_need > 28 * 1024 * 1024:
        cp_kwargs["vmem_limit_bytes"] = min(int(vmem_need * 1.25), 96 * 1024 * 1024)

    out_padded = pl.pallas_call(
        _linear_kernel,
        out_shape=jax.ShapeDtypeStruct((M_pad, N_pad), jnp.float32),
        grid_spec=pltpu.PrefetchScalarGridSpec(
            num_scalar_prefetch=0,
            grid=grid,
            in_specs=[
                pl.BlockSpec((tm, tk), lambda i, j, k: (i, k)),   # x tile
                pl.BlockSpec((tk, tn), lambda i, j, k: (k, j)),   # W.T tile (K, N)
                pl.BlockSpec((1, tn), lambda i, j, k: (0, j)),    # bias tile
            ],
            out_specs=pl.BlockSpec((tm, tn), lambda i, j, k: (i, j)),
        ),
        compiler_params=pltpu.CompilerParams(**cp_kwargs),
        cost_estimate=pl.CostEstimate(
            flops=2 * M_pad * N_pad * K_pad,
            transcendentals=0,
            bytes_accessed=bytes_accessed,
        ),
    )(x_p, w_p, b_p)

    return out_padded[:M, :n_out]


def linear_forward(x, weight, bias=None, *, tm=512, tn=512, tk=1024,
                   compute_dtype=jnp.float32, use_pallas=None):
    """y = x @ weight.T + bias (torch.nn.Linear forward).

    x: (M, K), weight: (N, K), bias: (N,).
    compute_dtype: jnp.float32 (default, tightest vs the f64 PyTorch reference)
    or jnp.bfloat16 for MXU-native throughput with f32 accumulation.
    """
    M, K = x.shape
    N, K2 = weight.shape
    assert K == K2, "in_features mismatch"

    if use_pallas is None:
        # Tiny problems: pad copies + launch overhead dominate the Pallas path.
        use_pallas = (M * N * K) >= (1 << 18)
    if not use_pallas:
        y = jnp.dot(x.astype(jnp.float32), weight.astype(jnp.float32).T,
                    preferred_element_type=jnp.float32)
        return y if bias is None else y + bias.astype(jnp.float32)[None, :]

    # Weights are static in inference: for repeated calls, hoist
    # prepare_linear_params() out of the hot path (or jit the caller so XLA
    # constant-folds it).
    w_p, b_p = prepare_linear_params(weight, bias, compute_dtype)
    return linear_forward_prepared(x, w_p, b_p, N, tm=tm, tn=tn, tk=tk,
                                   compute_dtype=compute_dtype)


if __name__ == "__main__":
    # Matches Linear(20, 30) applied to input of shape (20, 20).
    in_features, out_features, batch = 20, 30, 20

    key = jax.random.PRNGKey(0)
    k_x, k_w, k_b = jax.random.split(key, 3)
    x = jax.random.normal(k_x, (batch, in_features), dtype=jnp.float32)
    weight = jax.random.uniform(
        k_w, (out_features, in_features), dtype=jnp.float32, minval=-0.1, maxval=0.1
    )
    bias = jax.random.uniform(
        k_b, (out_features,), dtype=jnp.float32, minval=-0.1, maxval=0.1
    )

    out = linear_forward(x, weight, bias, use_pallas=True)  # force Pallas path
    out = jax.block_until_ready(out)
    ref = x @ weight.T + bias[None, :]
    assert out.shape == (batch, out_features)
    assert jnp.allclose(out, ref, atol=1e-5, rtol=1e-5)

    # Non-tile-multiple, multi-block shapes: exercises divisor tile picking,
    # the >=2-parallel-blocks heuristic and the K-resident accumulation.
    M2, K2, N2 = 200, 300, 260
    k1, k2, k3 = jax.random.split(jax.random.PRNGKey(1), 3)
    x2 = jax.random.normal(k1, (M2, K2), dtype=jnp.float32)
    w2 = jax.random.normal(k2, (N2, K2), dtype=jnp.float32) * 0.05
    b2 = jax.random.normal(k3, (N2,), dtype=jnp.float32)
    ref2 = x2 @ w2.T + b2[None, :]

    out2 = jax.block_until_ready(linear_forward(x2, w2, b2, use_pallas=True))
    assert jnp.allclose(out2, ref2, atol=1e-4, rtol=1e-4)

    # bf16-operand / f32-accumulation path (MXU-native), looser tolerance.
    out3 = jax.block_until_ready(
        linear_forward(x2, w2, b2, use_pallas=True, compute_dtype=jnp.bfloat16)
    )
    assert jnp.allclose(out3, ref2, atol=5e-2, rtol=5e-2)

    print("KERNEL_OK")
</pallas_src>

<mosaic_0001>
module attributes {stable_mosaic.version = 11 : i64} {
  func.func @_linear_kernel(%arg0: i32, %arg1: i32, %arg2: i32, %arg3: memref<8x128xf32, #tpu.memory_space<vmem>>, %arg4: memref<128x128xf32, #tpu.memory_space<vmem>>, %arg5: memref<1x128xf32, #tpu.memory_space<vmem>>, %arg6: memref<8x128xf32, #tpu.memory_space<vmem>>) attributes {dimension_semantics = [#tpu.dimension_semantics<parallel>, #tpu.dimension_semantics<parallel>, #tpu.dimension_semantics<arbitrary>], iteration_bounds = array<i64: 3, 1, 1>, scalar_prefetch = 0 : i64, scratch_operands = 0 : i64, tpu.core_type = #tpu.core_type<tc>, window_params = [{transform_indices = @transform_0, window_bounds = array<i64: 8, 128>}, {transform_indices = @transform_1, window_bounds = array<i64: 128, 128>}, {transform_indices = @transform_2, window_bounds = array<i64: 1, 128>}, {transform_indices = @transform_3, window_bounds = array<i64: 8, 128>}]} {
    %c0_i32 = arith.constant 0 : i32
    %0 = arith.cmpi eq, %arg2, %c0_i32 : i32
    %1 = arith.extui %0 : i1 to i32
    %c0_i32_0 = arith.constant 0 : i32
    %2 = arith.cmpi ne, %1, %c0_i32_0 : i32
    scf.if %2 {
      %c0_8 = arith.constant 0 : index
      %c0_9 = arith.constant 0 : index
      %9 = vector.load %arg5[%c0_8, %c0_9] : memref<1x128xf32, #tpu.memory_space<vmem>>, vector<1x128xf32>
      %10 = vector.shape_cast %9 : vector<1x128xf32> to vector<1x128xf32>
      %11 = vector.broadcast %10 : vector<1x128xf32> to vector<8x128xf32>
      %c0_10 = arith.constant 0 : index
      %c0_11 = arith.constant 0 : index
      %12 = vector.load %arg6[%c0_10, %c0_11] : memref<8x128xf32, #tpu.memory_space<vmem>>, vector<8x128xf32>
      tpu.vector_store %arg6[%c0_10, %c0_11], %11 {strides = array<i32>} : memref<8x128xf32, #tpu.memory_space<vmem>>, vector<8x128xf32>,
    } else {
    }
    %c0 = arith.constant 0 : index
    %c0_1 = arith.constant 0 : index
    %3 = vector.load %arg6[%c0, %c0_1] : memref<8x128xf32, #tpu.memory_space<vmem>>, vector<8x128xf32>
    %c0_2 = arith.constant 0 : index
    %c0_3 = arith.constant 0 : index
    %4 = vector.load %arg3[%c0_2, %c0_3] : memref<8x128xf32, #tpu.memory_space<vmem>>, vector<8x128xf32>
    %c0_4 = arith.constant 0 : index
    %c0_5 = arith.constant 0 : index
    %5 = vector.load %arg4[%c0_4, %c0_5] : memref<128x128xf32, #tpu.memory_space<vmem>>, vector<128x128xf32>
    %cst = arith.constant dense<0.000000e+00> : vector<8x128xf32>
    %6 = tpu.matmul %4, %5, %cst {dimension_numbers = #tpu.dot_dimension_numbers<[1], [0], [0], [1], [0, 0, 1, 1], [], []>} : vector<8x128xf32>, vector<128x128xf32>, vector<8x128xf32> -> vector<8x128xf32>
    %7 = arith.addf %3, %6 : vector<8x128xf32>
    %c0_6 = arith.constant 0 : index
    %c0_7 = arith.constant 0 : index
    %8 = vector.load %arg6[%c0_6, %c0_7] : memref<8x128xf32, #tpu.memory_space<vmem>>, vector<8x128xf32>
    tpu.vector_store %arg6[%c0_6, %c0_7], %7 {strides = array<i32>} : memref<8x128xf32, #tpu.memory_space<vmem>>, vector<8x128xf32>,
    return
  }
  func.func @transform_0(%arg0: i32, %arg1: i32, %arg2: i32) -> (i32, i32) {
    %c0_i32 = arith.constant 0 : i32
    return %arg0, %arg2 : i32, i32
  }
  func.func @transform_1(%arg0: i32, %arg1: i32, %arg2: i32) -> (i32, i32) {
    %c0_i32 = arith.constant 0 : i32
    return %arg2, %arg1 : i32, i32
  }
  func.func @transform_2(%arg0: i32, %arg1: i32, %arg2: i32) -> (i32, i32) {
    %c0_i32 = arith.constant 0 : i32
    %c0_i32_0 = arith.constant 0 : i32
    return %c0_i32, %arg1 : i32, i32
  }
  func.func @transform_3(%arg0: i32, %arg1: i32, %arg2: i32) -> (i32, i32) {
    %c0_i32 = arith.constant 0 : i32
    return %arg0, %arg1 : i32, i32
  }
}

</mosaic_0001>

<bundles_post_ra>
// kernel: tpu_custom_call.1
= control target key start
LH: loop header
LB: loop body
LE: loop exit
PB: predicated region body
PF: predicated region fallthrough
CT: control target
= control target key end

     0   :  { %8 = vsyncpa [#allocation3], 0  ;;  %s1044_s0 = inlined_call_operand.hbm [shape: f32[24,128], index: 0, kind: input, shape index: {}]   ;;  %s1045_s1 = inlined_call_operand.hbm [shape: f32[128,128], index: 1, kind: input, shape index: {}]   ;;  %s1046_s2 = inlined_call_operand.vmem [shape: f32[1,128], index: 2, kind: input, shape index: {}]   ;;  %s1047_s3 = inlined_call_operand.hbm [shape: f32[24,128], index: 3, kind: output, shape index: {}]  }
   0x1   :  { %10 = vsyncpa [#allocation3 + $0x1], 0 }
   0x2   :  { %11 = vsyncpa [#allocation6], 0 }
   0x3   :  { %12 = vsyncpa [#allocation4], 0 }
   0x4   :  { %14 = vsyncpa [#allocation4 + $0x1], 0  ;;  %s822_s12 = smov 0   ;;  %s824_s13 = smov 0  }
   0x5   :  { %s826_s14 = smov 0   ;;  %s828_s15 = smov 0  }
   0x6   :  { %s830_s16 = smov 0   ;;  %s832_s17 = smov 0  }
   0x7 LB: > { %s477_s18 = sadd.s32 4294967295, %s792_s17   ;;  %s478_s19 = sadd.s32 4294967294, %s792_s17   ;;  %s792_s17 = sphi %s832_s17, %s20_s17   ;;  %s788_s16 = sphi %s830_s16, %s1070_s16   ;;  %s784_s15 = sphi %s828_s15, %s1069_s15   ;;  %s780_s14 = sphi %s826_s14, %s1068_s14   ;;  %s776_s13 = sphi %s824_s13, %s1067_s13   ;;  %s772_s12 = sphi %s822_s12, %s1066_s12  }
   0x8   : > { %p61_p0 = scmp.ne.s32.totalorder %s776_s13, %s772_s12  ;;  %p856_p1 = scmp.eq.s32.totalorder %s477_s18, 0 }
   0x9   : > { %p860_p2 = scmp.eq.s32.totalorder %s477_s18, 2  ;;  %p147_p3 = scmp.eq.s32.totalorder %s478_s19, 2 }
   0xa   : > { %s1052_s20 = scalar_select %p856_p1, 1, 0 }
   0xb   : > { %s1053_s21 = scalar_select %p860_p2, 1, 0 }
   0xc   : > { %p866_p4 = por %p856_p1, %p61_p0  ;;  %p479_p5 = scmp.ge.s32.totalorder %s792_s17, 1 }
   0xd   : > { %p871_p6 = por %p147_p3, %p61_p0  ;;  %p154_p7 = scmp.lt.s32.totalorder %s792_s17, 4 }
   0xe   : > { %s1054_s22 = scalar_select %p866_p4, 1, 0 }
   0xf   : > { %s1055_s23 = scalar_select %p871_p6, 1, 0 }
  0x10   : > { %p876_p8 = pnand %p479_p5, %p154_p7  ;;  %s794_s25 = smov [#allocation5]  }
  0x11   : > { %s170_s26 = sshll.u32 %s794_s25, 4  ;;  %s39_s28 = sadd.s32 1, %s788_s16  ;;  %s171_s26 = int_to_ptr.vmem [resolvable:$true] %s170_s26 }
  0x12   : > { %s1056_s24 = scalar_select %p876_p8, 1, 0 }
  0x13   : > { %p578_p9 = pneg %p876_p8  ;;  %s648_s4 = scalar_lea.hbm %s1045_s1, 2048 }
  0x14   : > { %p649_p11 = scmp.ne.s32.totalorder %s1045_s1, %s648_s4  ;;  %p655_p3 = scmp.lt.u32.totalorder %s648_s4, %s1045_s1 }
  0x15   : > { %p884_p10 = pnand %p578_p9, %p856_p1 }
  0x17   : > { %p650_p12 = pneg %p884_p10 }
  0x19   : > { %p651_p13 = pnand %p650_p12, %p649_p11 }
  0x1b   : > { %p652_p0 = pneg %p651_p13 }
  0x1d   : > { %p657_p5 = pnand %p655_p3, %p652_p0 }
  0x1f   : > { %660 = shalt.err (!%p657_p5)
}
  0x20   : > { %s661_s9 = scalar_lea.vmem %s171_s26, 2048  ;;  %p669_p1 = scmp.lt.s32.totalorder %s171_s26, %s171_s26 }
  0x21   : > { %p662_p7 = scmp.ne.s32.totalorder %s171_s26, %s661_s9  ;;  %p670_p4 = scmp.lt.s32.totalorder %s661_s9, %s661_s9 }
  0x23   : > { %p664_p9 = pnand %p662_p7, %p650_p12  ;;  %p671_p8 = por %p670_p4, %p669_p1 }
  0x25   : > { %p665_p6 = pneg %p664_p9 }
  0x27   : > { %p672_p2 = pnand %p671_p8, %p665_p6 }
  0x29   : > { %675 = shalt.err (!%p672_p2)
}
  0x2a   : > { %s795_s10 = smov 128   ;;  %s796_s11 = smov 8  }
  0x2b   : > { %581 = dma.hbm_to_vmem [thread:$0]  (!%p884_p10), %s1045_s1, 2048, %s171_s26, [#allocation6], %s795_s10, %s795_s10, %s796_s11  }
  0x2c   : > { %p41_p1 = scmp.ge.s32.totalorder %s39_s28, 3  ;;  %s48_s25 = sadd.s32 1, %s780_s14 }
  0x2d   : > { %p55_p2 = scmp.ne.s32.totalorder %s780_s14, %s776_s13  ;;  %p56_p4 = scmp.eq.s32.totalorder %s792_s17, 0 }
  0x2e   : > { %s1072_s28 = smov (%p41_p1, %s39_s28), 0  ;;  %p1059_p8 = scmp.ne.s32.totalorder %s1053_s21, 0 }
  0x2f   : > { %p911_p6 = por %p56_p4, %p55_p2  ;;  %s43_s27 = ssub.s32 %s788_s16, %s1072_s28 }
  0x30   : > { %p917_p11 = por %p1059_p8, %p55_p2  ;;  %p591_p12 = scmp.lt.s32.totalorder %s792_s17, 3 }
  0x31   : > { %p46_p10 = scmp.eq.s32.totalorder %s43_s27, 0  ;;  %s190_s26 = sand.u32 1, %s780_s14  }
  0x32   : > { %s483_s4 = sshll.u32 %s190_s26, 3  ;;  %s484_s6 = sshll.u32 %s788_s16, 7 }
  0x33   : > { %s926_s5 = scalar_select %p46_p10, %s780_s14, %s48_s25  }
  0x34   : > { %s932_s9 = scalar_lea.hbm %s1044_s0, %s484_s6  ;;  %s194_s21 = scalar_lea.vmem [#allocation2], %s483_s4 }
  0x35   : > { %s202_s10 = sshll.u32 %s194_s21, 4  ;;  %p938_p13 = pnand %p591_p12, %p911_p6  ;;  %s934_s10 = int_to_ptr.vmem [resolvable:$true] %s202_s10 }
  0x36   : > { %s191_s18 = scalar_lea.sflag [#allocation3], %s190_s26  ;;  %s676_s19 = scalar_lea.hbm %s932_s9, 128 }
  0x37   : > { %p677_p0 = scmp.ne.s32.totalorder %s932_s9, %s676_s19  ;;  %p678_p3 = pneg %p938_p13 }
  0x38   : > { %s681_s4 = scalar_lea.hbm %s1044_s0, 384  ;;  %p682_p9 = scmp.lt.u32.totalorder %s932_s9, %s1044_s0 }
  0x39   : > { %p679_p5 = pnand %p678_p3, %p677_p0  ;;  %p683_p1 = scmp.lt.u32.totalorder %s681_s4, %s676_s19 }
  0x3a   : > { %p685_p4 = scmp.lt.u32.totalorder %s676_s19, %s932_s9 }
  0x3b   : > { %p680_p7 = pneg %p679_p5  ;;  %p684_p2 = por %p683_p1, %p682_p9 }
  0x3d   : > { %p686_p6 = por %p685_p4, %p684_p2 }
  0x3f   : > { %p687_p8 = pnand %p686_p6, %p680_p7 }
  0x41   : > { %690 = shalt.err (!%p687_p8)
}
  0x42   : > { %s691_s26 = scalar_lea.vmem %s934_s10, 128  ;;  %s797_s7 = smov [#allocation2]  }
  0x43   : > { %p692_p12 = scmp.ne.s32.totalorder %s934_s10, %s691_s26  ;;  %s696_s8 = sshll.u32 %s797_s7, 4  ;;  %s697_s8 = int_to_ptr.vmem [resolvable:$false] %s696_s8 }
  0x44   : > { %s698_s21 = scalar_lea.vmem %s697_s8, 256  ;;  %p699_p5 = scmp.lt.s32.totalorder %s934_s10, %s697_s8 }
  0x45   : > { %p694_p10 = pnand %p692_p12, %p678_p3  ;;  %p700_p9 = scmp.lt.s32.totalorder %s698_s21, %s691_s26 }
  0x47   : > { %p695_p0 = pneg %p694_p10  ;;  %p701_p1 = por %p700_p9, %p699_p5 }
  0x49   : > { %p702_p2 = pnand %p701_p1, %p695_p0 }
  0x4b   : > { %705 = shalt.err (!%p702_p2)
}
  0x4c   : > { %585 = dma.hbm_to_vmem [thread:$0]  (!%p938_p13), %s932_s9, 128, %s934_s10, %s191_s18  }
  0x4d   : > { %p1062_p7 = scmp.ne.s32.totalorder %s1056_s24, 0 }
  0x4e   : > { %s970_s19 = sand.u32 (!%p1062_p7), 1, %s776_s13   ;;  %p1063_p3 = scmp.ne.s32.totalorder (!%p1062_p7), %s1054_s22, 0 }
  0x4f   : > { %211 = sbr.rel (%p1062_p7) target bundleno = 353 (0x161), region = 32  ;;  %s486_s25 = sshll.u32 (!%p1062_p7), %s970_s19, 3 }
  0x50   : > { %s214_s27 = scalar_lea.sflag (!%p1062_p7), [#allocation3], %s970_s19  ;;  %s976_s4 = scalar_lea.vmem (!%p1062_p7), [#allocation2], %s486_s25 }
  0x56   : > { %759 = dma.done.wait (%p1063_p3), %s214_s27, 128  }
  0x57   : > { %761 = vsyncadd (%p1063_p3), %s214_s27, 4294967168  ;;  %p1064_p13 = scmp.ne.s32.totalorder %s1052_s20, 0 }
  0x59   : > { %763 = dma.done.wait (%p1064_p13), [#allocation6], 2048  }
  0x5a   : > { %765 = vsyncadd (%p1064_p13), [#allocation6], 4294965248  ;;  %v798_v0 = vmov 0.0|0.0   ;;  %vm799_vm0 = vmmov 0   ;;  %v800_v1 = vmov 0.0   ;;  %v265_v2 = vld [vmem:[#allocation5] sm:$0xff] }
  0x5b   : > { %546 = vmatprep.subr.bf16.mxu0 %v798_v0  ;;  %543 = vmatprep.mubr.msk.f32.mxu0 %vm799_vm0, %v800_v1  ;;  %v266_v3 = vld [vmem:[#allocation5 + $0x8] sm:$0xff]  ;;  %v267_v4 = vld [vmem:[#allocation5 + $0x10] sm:$0xff]  ;;  %v268_v6 = vld [vmem:[#allocation5 + $0x18] sm:$0xff]  ;;  %s491_s24 = sshll.u32 %s784_s15, 7  ;;  %s246_s9 = scalar_lea.vmem [#allocation7], %s486_s25 }
  0x5c   : > { %v547_v5 = vpack.c.bf16 %v266_v3, %v265_v2  ;;  %v550_v7 = vpack.c.bf16 %v268_v6, %v267_v4  ;;  %v269_v8 = vld [vmem:[#allocation5 + $0x20] sm:$0xff]  ;;  %v270_v9 = vld [vmem:[#allocation5 + $0x28] sm:$0xff]  ;;  %v271_v11 = vld [vmem:[#allocation5 + $0x30] sm:$0xff]  ;;  %s368_s10 = sshll.u32 %s246_s9, 4  ;;  %s996_s29 = scalar_lea.hbm %s1047_s3, %s491_s24  ;;  %s998_s10 = int_to_ptr.vmem [resolvable:$true] %s368_s10 }
  0x5d   : > { %v553_v10 = vpack.c.bf16 %v270_v9, %v269_v8  ;;  %v272_v12 = vld [vmem:[#allocation5 + $0x38] sm:$0xff]  ;;  %v273_v14 = vld [vmem:[#allocation5 + $0x40] sm:$0xff]  ;;  %v274_v15 = vld [vmem:[#allocation5 + $0x48] sm:$0xff]  ;;  %s354_s6 = scalar_lea.sflag [#allocation4], %s970_s19  ;;  %s706_s26 = scalar_lea.vmem %s998_s10, 128 }
  0x5e   : > { %548 = vmatpush3.bf16.msra.mxu0 %v547_v5  ;;  %v556_v13 = vpack.c.bf16 %v272_v12, %v271_v11  ;;  %v559_v16 = vpack.c.bf16 %v274_v15, %v273_v14  ;;  %v275_v17 = vld [vmem:[#allocation5 + $0x50] sm:$0xff]  ;;  %v276_v18 = vld [vmem:[#allocation5 + $0x58] sm:$0xff]  ;;  %v277_v20 = vld [vmem:[#allocation5 + $0x60] sm:$0xff]  ;;  %p707_p4 = scmp.ne.s32.totalorder %s998_s10, %s706_s26  ;;  %s801_s15 = smov [#allocation7]  }
  0x5f   : > { %549 = vmatprep.subr.bf16.mxu0 %v798_v0  ;;  %v562_v19 = vpack.c.bf16 %v276_v18, %v275_v17  ;;  %v278_v21 = vld [vmem:[#allocation5 + $0x68] sm:$0xff]  ;;  %v279_v23 = vld [vmem:[#allocation5 + $0x70] sm:$0xff]  ;;  %v280_v24 = vld [vmem:[#allocation5 + $0x78] sm:$0xff]  ;;  %s710_s7 = sshll.u32 %s801_s15, 4  ;;  %s711_s7 = int_to_ptr.vmem [resolvable:$false] %s710_s7 }
  0x60   : > { %v565_v22 = vpack.c.bf16 %v278_v21, %v277_v20  ;;  %v568_v25 = vpack.c.bf16 %v280_v24, %v279_v23  ;;  %v264_v26 = vld [vmem:[%s976_s4] sm:$0xff]  ;;  %p708_p6 = pnand %p707_p4, %p917_p11  ;;  %s712_s8 = scalar_lea.vmem %s711_s7, 256 }
  0x61   : > { %v489_v27 = vld [vmem:[%s1046_s2] ss:$0 sm:$0xff]  ;;  %p713_p12 = scmp.lt.s32.totalorder %s998_s10, %s711_s7  ;;  %p714_p10 = scmp.lt.s32.totalorder %s712_s8, %s706_s26 }
  0x62   : > { %551 = vmatpush3.bf16.msra.mxu0 %v550_v7  ;;  %p709_p8 = pneg %p708_p6 }
  0x63   : > { %552 = vmatprep.subr.bf16.mxu0 %v798_v0  ;;  %p715_p0 = por %p714_p10, %p713_p12 }
  0x65   : > { %p716_p5 = pnand %p715_p0, %p709_p8 }
  0x66   : > { %554 = vmatpush3.bf16.msra.mxu0 %v553_v10 }
  0x67   : > { %555 = vmatprep.subr.bf16.mxu0 %v798_v0 }
  0x6a   : > { %557 = vmatpush3.bf16.msra.mxu0 %v556_v13 }
  0x6b   : > { %558 = vmatprep.subr.bf16.mxu0 %v798_v0 }
  0x6e   : > { %560 = vmatpush3.bf16.msra.mxu0 %v559_v16 }
  0x6f   : > { %561 = vmatprep.subr.bf16.mxu0 %v798_v0 }
  0x72   : > { %563 = vmatpush3.bf16.msra.mxu0 %v562_v19 }
  0x73   : > { %564 = vmatprep.subr.bf16.mxu0 %v798_v0 }
  0x76   : > { %566 = vmatpush3.bf16.msra.mxu0 %v565_v22 }
  0x77   : > { %567 = vmatprep.subr.bf16.mxu0 %v798_v0 }
  0x7a   : > { %569 = vmatpush3.bf16.msra.mxu0 %v568_v25 }
  0x7d   : > { %544 = vmatmul.mubr.f32.vlgmr.msra.gmra.mrb[0].mxu0 %v264_v26 }
 0x150   : > { %v347_v28 = vpop.f32.mrb[0].mxu0 }
 0x151   : > { %v351_v29 = vadd.f32 %v489_v27, %v347_v28  ;;  %v545_v30 = vpop.f32.mrb[1].mxu0 }
 0x153   : > { %352 = vst [vmem:[%s246_s9] sm:$0xff] %v351_v29 }
 0x154   : > { %719 = shalt.err (!%p716_p5)
}
 0x155   : > { %s720_s21 = scalar_lea.hbm %s996_s29, 128  ;;  %s724_s27 = scalar_lea.hbm %s1047_s3, 384 }
 0x156   : > { %p721_p9 = scmp.ne.s32.totalorder %s996_s29, %s720_s21  ;;  %p725_p7 = scmp.lt.u32.totalorder %s996_s29, %s1047_s3 }
 0x157   : > { %p726_p3 = scmp.lt.u32.totalorder %s724_s27, %s720_s21  ;;  %p728_p4 = scmp.lt.u32.totalorder %s720_s21, %s996_s29 }
 0x158   : > { %p722_p1 = pnand %p721_p9, %p917_p11 }
 0x159   : > { %p727_p13 = por %p726_p3, %p725_p7 }
 0x15a   : > { %p723_p2 = pneg %p722_p1 }
 0x15b   : > { %p729_p6 = por %p728_p4, %p727_p13 }
 0x15d   : > { %p730_p8 = pnand %p729_p6, %p723_p2 }
 0x15f   : > { %733 = shalt.err (!%p730_p8)
}
 0x160   : > { %576 = dma.vmem_to_hbm [thread:$0]  (%p917_p11), %s998_s10, 128, %s996_s29, %s354_s6  }
 0x161 PF: > { %p593_p12 = scmp.ge.s32.totalorder %s792_s17, 2  ;;  %s380_s22 = sand.u32 1, %s772_s12  }
 0x162   : > { %p1065_p10 = scmp.ne.s32.totalorder %s1055_s23, 0  ;;  %s381_s24 = scalar_lea.sflag [#allocation4], %s380_s22 }
 0x164   : > { %p587_p0 = pnand %p593_p12, %p1065_p10 }
 0x166   : > { %767 = dma.done.wait (!%p587_p0), %s381_s24, 128  }
 0x167   : > { %769 = vsyncadd (!%p587_p0), %s381_s24, 4294967168  ;;  %s20_s17 = sadd.s32 1, %s792_s17   ;;  %s1066_s12 = smov %s776_s13 }
 0x168   : > { %p17_p5 = scmp.ge.s32.totalorder %s20_s17, 5   ;;  %s1067_s13 = smov %s780_s14 }
 0x169   : > { %s1068_s14 = smov %s926_s5  ;;  %s1069_s15 = smov %s788_s16 }
 0x16a   : > { %s1070_s16 = smov %s1072_s28  ;;  %19 = sbr.rel (!%p17_p5) target bundleno = 7 (0x7), region = 89 }
 0x171   :  { %386 = vsyncpa [#allocation3], 1 }
 0x172   :  { %388 = vsyncpa [#allocation3 + $0x1], 1 }
 0x173   :  { %389 = vsyncpa [#allocation6], 1 }
 0x174   :  { %390 = vsyncpa [#allocation4], 1 }
 0x175   :  { %392 = vsyncpa [#allocation4 + $0x1], 1 }

</bundles_post_ra>
